<compile_context>
chip_gen: v6e
topology: v6e:2x2x1
jax: 0.10.0
libtpu: 0.0.40
codegen_flags: <defaults>
</compile_context>

<pallas_src>
import functools

import jax
import jax.numpy as jnp
from jax.experimental import pallas as pl
from jax.experimental.pallas import tpu as pltpu


# ----------------------------------------------------------------------------
# Pallas kernel: runs the whole (sequential) RNN + linear head in one call.
# All operands are tiny and live fully in VMEM.  For large T/H this would be
# converted to a T-chunked pipeline (grid over T, h carried in scratch across
# an "arbitrary" axis) to respect the smaller v7x VMEM; not needed here.
# ----------------------------------------------------------------------------
def rnn_regressor_kernel(
    x_ref,       # (T*B, I)   time-major, flattened input
    h0_ref,      # (L, B, H)  initial hidden state
    w_ih0_ref,   # (I, H)     layer-0 input weights   (== W_ih_l0.T)
    w_ihr_ref,   # (max(L-1,1), H, H) input weights of layers 1..L-1 (== W_ih_l.T)
    w_hh_ref,    # (L, H, H)  recurrent weights        (== W_hh_l.T)
    b_ref,       # (L, 1, H)  combined bias b_ih + b_hh
    w_out_ref,   # (H, O_pad) linear head weights, lane-padded (== W_lin.T)
    b_out_ref,   # (1, O_pad)
    out_ref,     # (T*B, O_pad) per-step output of linear head (lane-dense)
    hn_ref,      # (L, B, H)  final hidden state
    seq_buf,     # scratch (T*B, H): current layer's projected-input / output seq
):
    L, B, H = h0_ref.shape
    TB = x_ref.shape[0]
    T = TB // B

    # ----- layer 0: batched input projection (off the recurrent chain) -----
    seq_buf[...] = (
        jnp.dot(x_ref[...], w_ih0_ref[...], preferred_element_type=jnp.float32)
        + b_ref[0]
    )
    w_hh0 = w_hh_ref[0]                          # (H, H)
    h = h0_ref[0]                                # (B, H)
    for t in range(T):                           # fully unrolled (T static, small)
        rows = pl.ds(t * B, B)                   # static row slice into (T*B, H)
        h = jnp.tanh(
            seq_buf[rows]
            + jnp.dot(h, w_hh0, preferred_element_type=jnp.float32)
        )
        seq_buf[rows] = h                        # overwrite proj with hidden state
    hn_ref[0] = h

    # ----- layers 1 .. L-1 -----
    for l in range(1, L):                        # static loop over layers
        # Batched projection of the previous layer's whole output sequence.
        seq_buf[...] = (
            jnp.dot(seq_buf[...], w_ihr_ref[l - 1],
                    preferred_element_type=jnp.float32)
            + b_ref[l]
        )
        w_hh = w_hh_ref[l]
        h = h0_ref[l]
        for t in range(T):
            rows = pl.ds(t * B, B)
            h = jnp.tanh(
                seq_buf[rows]
                + jnp.dot(h, w_hh, preferred_element_type=jnp.float32)
            )
            seq_buf[rows] = h
        hn_ref[l] = h

    # ----- linear head on every timestep, lane-dense padded output store -----
    out_ref[...] = (
        jnp.dot(seq_buf[...], w_out_ref[...], preferred_element_type=jnp.float32)
        + b_out_ref[...]
    )


# ----------------------------------------------------------------------------
# Wrapper
# ----------------------------------------------------------------------------
@jax.jit
def rnn_regressor_forward(x, h0, params):
    """x: (B, T, I) float32, h0: (L, B, H) float32 -> ((B, T, O), (L, B, H))."""
    B, T, I = x.shape
    L, _, H = h0.shape
    O = params["w_out"].shape[1]
    O_pad = ((O + 127) // 128) * 128             # lane-dense head output width

    # Time-major, flattened input (cheap at these shapes; for production sizes
    # this transpose would be folded into a BlockSpec index_map instead).
    x_flat = jnp.transpose(x, (1, 0, 2)).reshape(T * B, I)

    b_comb = params["b_ih"] + params["b_hh"]     # (L, 1, H) combined bias
    w_out_p = jnp.pad(params["w_out"], ((0, 0), (0, O_pad - O)))
    b_out_p = jnp.pad(params["b_out"], ((0, 0), (0, O_pad - O)))

    w_ihr = params["w_ihr"]
    if L == 1:                                   # avoid a zero-sized operand
        w_ihr = jnp.zeros((1, H, H), jnp.float32)

    out_flat, hn = pl.pallas_call(
        rnn_regressor_kernel,
        out_shape=(
            jax.ShapeDtypeStruct((T * B, O_pad), jnp.float32),
            jax.ShapeDtypeStruct((L, B, H), jnp.float32),
        ),
        in_specs=[pl.BlockSpec(memory_space=pltpu.MemorySpace.VMEM)] * 8,
        out_specs=(
            pl.BlockSpec(memory_space=pltpu.MemorySpace.VMEM),
            pl.BlockSpec(memory_space=pltpu.MemorySpace.VMEM),
        ),
        scratch_shapes=[pltpu.VMEM((T * B, H), jnp.float32)],
    )(
        x_flat, h0,
        params["w_ih0"], w_ihr, params["w_hh"], b_comb,
        w_out_p, b_out_p,
    )

    out = out_flat[:, :O].reshape(T, B, O).transpose(1, 0, 2)   # (B, T, O)
    return out, hn


# ----------------------------------------------------------------------------
# Deterministic parameter init (mirrors nn.RNN / nn.Linear shapes;
# uniform(-1/sqrt(H), 1/sqrt(H)) like PyTorch's default).
# ----------------------------------------------------------------------------
def init_params(key, input_size, hidden_size, target_size, nb_layers):
    I, H, O, L = input_size, hidden_size, target_size, nb_layers
    assert L >= 1
    bound = 1.0 / jnp.sqrt(jnp.float32(H))
    keys = jax.random.split(key, 7)
    u = lambda k, shape: jax.random.uniform(
        k, shape, dtype=jnp.float32, minval=-bound, maxval=bound)
    return {
        "w_ih0": u(keys[0], (I, H)),             # layer 0 input weights (transposed)
        "w_ihr": u(keys[1], (max(L - 1, 1), H, H)),  # layers 1..L-1 input weights
        "w_hh":  u(keys[2], (L, H, H)),          # recurrent weights
        "b_ih":  u(keys[3], (L, 1, H)),
        "b_hh":  u(keys[4], (L, 1, H)),
        "w_out": u(keys[5], (H, O)),             # linear head (transposed)
        "b_out": u(keys[6], (1, O)),
    }


# Pure-JAX reference for correctness checking.
def rnn_regressor_reference(x, h0, params):
    B, T, I = x.shape
    L = params["w_hh"].shape[0]
    hs = [h0[l] for l in range(L)]
    layer_in = x
    for l in range(L):
        w_ih = params["w_ih0"] if l == 0 else params["w_ihr"][l - 1]
        w_hh = params["w_hh"][l]
        b = params["b_ih"][l] + params["b_hh"][l]
        h = hs[l]
        outs = []
        for t in range(T):
            h = jnp.tanh(layer_in[:, t, :] @ w_ih + h @ w_hh + b)
            outs.append(h)
        hs[l] = h
        layer_in = jnp.stack(outs, axis=1)
    out = layer_in @ params["w_out"] + params["b_out"]
    return out, jnp.stack(hs, axis=0)


if __name__ == "__main__":
    # Small shapes consistent with the module's forward:
    # batch=2, seq=8, input_size=4, hidden_size=32, nb_layers=2, target_size=3.
    B, T, I, H, L, O = 2, 8, 4, 32, 2, 3
    # TODO(synk): nonlinearity='relu' variant not wired (tanh only, the default).

    key = jax.random.PRNGKey(0)
    k_x, k_p = jax.random.split(key)
    x = jax.random.normal(k_x, (B, T, I), dtype=jnp.float32)
    h0 = jnp.zeros((L, B, H), dtype=jnp.float32)   # init_hidden(): zeros
    params = init_params(k_p, I, H, O, L)

    out, hn = rnn_regressor_forward(x, h0, params)
    out = jax.block_until_ready(out)
    hn = jax.block_until_ready(hn)

    out_ref, hn_ref = rnn_regressor_reference(x, h0, params)
    assert out.shape == (B, T, O) and hn.shape == (L, B, H)
    assert jnp.allclose(out, out_ref, atol=1e-5, rtol=1e-5)
    assert jnp.allclose(hn, hn_ref, atol=1e-5, rtol=1e-5)

    print("KERNEL_OK")
</pallas_src>

<mosaic_0001>
module attributes {stable_mosaic.version = 11 : i64} {
  func.func @rnn_regressor_kernel(%arg0: memref<16x4xf32, #tpu.memory_space<vmem>>, %arg1: memref<2x2x32xf32, #tpu.memory_space<vmem>>, %arg2: memref<4x32xf32, #tpu.memory_space<vmem>>, %arg3: memref<1x32x32xf32, #tpu.memory_space<vmem>>, %arg4: memref<2x32x32xf32, #tpu.memory_space<vmem>>, %arg5: memref<2x1x32xf32, #tpu.memory_space<vmem>>, %arg6: memref<32x128xf32, #tpu.memory_space<vmem>>, %arg7: memref<1x128xf32, #tpu.memory_space<vmem>>, %arg8: memref<16x128xf32, #tpu.memory_space<vmem>>, %arg9: memref<2x2x32xf32, #tpu.memory_space<vmem>>, %arg10: memref<16x32xf32, #tpu.memory_space<vmem>>) attributes {dimension_semantics = [], scalar_prefetch = 0 : i64, scratch_operands = 1 : i64, tpu.core_type = #tpu.core_type<tc>} {
    %c0 = arith.constant 0 : index
    %c0_0 = arith.constant 0 : index
    %0 = vector.load %arg0[%c0, %c0_0] : memref<16x4xf32, #tpu.memory_space<vmem>>, vector<16x4xf32>
    %c0_1 = arith.constant 0 : index
    %c0_2 = arith.constant 0 : index
    %1 = vector.load %arg2[%c0_1, %c0_2] : memref<4x32xf32, #tpu.memory_space<vmem>>, vector<4x32xf32>
    %cst = arith.constant dense<0.000000e+00> : vector<16x32xf32>
    %2 = tpu.matmul %0, %1, %cst {dimension_numbers = #tpu.dot_dimension_numbers<[1], [0], [0], [1], [0, 0, 1, 1], [], []>} : vector<16x4xf32>, vector<4x32xf32>, vector<16x32xf32> -> vector<16x32xf32>
    %c0_3 = arith.constant 0 : index
    %c0_4 = arith.constant 0 : index
    %c0_5 = arith.constant 0 : index
    %3 = vector.load %arg5[%c0_3, %c0_4, %c0_5] : memref<2x1x32xf32, #tpu.memory_space<vmem>>, vector<1x1x32xf32>
    %4 = vector.shape_cast %3 : vector<1x1x32xf32> to vector<1x32xf32>
    %5 = vector.broadcast %4 : vector<1x32xf32> to vector<16x32xf32>
    %6 = arith.addf %2, %5 : vector<16x32xf32>
    %c0_6 = arith.constant 0 : index
    %c0_7 = arith.constant 0 : index
    %7 = vector.load %arg10[%c0_6, %c0_7] : memref<16x32xf32, #tpu.memory_space<vmem>>, vector<16x32xf32>
    tpu.vector_store %arg10[%c0_6, %c0_7], %6 {strides = array<i32>} : memref<16x32xf32, #tpu.memory_space<vmem>>, vector<16x32xf32>,
    %c0_8 = arith.constant 0 : index
    %c0_9 = arith.constant 0 : index
    %c0_10 = arith.constant 0 : index
    %8 = vector.load %arg4[%c0_8, %c0_9, %c0_10] : memref<2x32x32xf32, #tpu.memory_space<vmem>>, vector<1x32x32xf32>
    %9 = vector.shape_cast %8 : vector<1x32x32xf32> to vector<32x32xf32>
    %c0_11 = arith.constant 0 : index
    %c0_12 = arith.constant 0 : index
    %c0_13 = arith.constant 0 : index
    %10 = vector.load %arg1[%c0_11, %c0_12, %c0_13] : memref<2x2x32xf32, #tpu.memory_space<vmem>>, vector<1x2x32xf32>
    %11 = vector.shape_cast %10 : vector<1x2x32xf32> to vector<2x32xf32>
    %c0_14 = arith.constant 0 : index
    %c0_15 = arith.constant 0 : index
    %12 = vector.load %arg10[%c0_14, %c0_15] : memref<16x32xf32, #tpu.memory_space<vmem>>, vector<2x32xf32>
    %cst_16 = arith.constant dense<0.000000e+00> : vector<2x32xf32>
    %13 = tpu.matmul %11, %9, %cst_16 {dimension_numbers = #tpu.dot_dimension_numbers<[1], [0], [0], [1], [0, 0, 1, 1], [], []>} : vector<2x32xf32>, vector<32x32xf32>, vector<2x32xf32> -> vector<2x32xf32>
    %14 = arith.addf %12, %13 : vector<2x32xf32>
    %15 = math.tanh %14 : vector<2x32xf32>
    %c0_17 = arith.constant 0 : index
    %c0_18 = arith.constant 0 : index
    %16 = vector.load %arg10[%c0_17, %c0_18] : memref<16x32xf32, #tpu.memory_space<vmem>>, vector<2x32xf32>
    tpu.vector_store %arg10[%c0_17, %c0_18], %15 {strides = array<i32>} : memref<16x32xf32, #tpu.memory_space<vmem>>, vector<2x32xf32>,
    %c2 = arith.constant 2 : index
    %c0_19 = arith.constant 0 : index
    %17 = vector.load %arg10[%c2, %c0_19] : memref<16x32xf32, #tpu.memory_space<vmem>>, vector<2x32xf32>
    %cst_20 = arith.constant dense<0.000000e+00> : vector<2x32xf32>
    %18 = tpu.matmul %15, %9, %cst_20 {dimension_numbers = #tpu.dot_dimension_numbers<[1], [0], [0], [1], [0, 0, 1, 1], [], []>} : vector<2x32xf32>, vector<32x32xf32>, vector<2x32xf32> -> vector<2x32xf32>
    %19 = arith.addf %17, %18 : vector<2x32xf32>
    %20 = math.tanh %19 : vector<2x32xf32>
    %c2_21 = arith.constant 2 : index
    %c0_22 = arith.constant 0 : index
    %21 = vector.load %arg10[%c2_21, %c0_22] : memref<16x32xf32, #tpu.memory_space<vmem>>, vector<2x32xf32>
    tpu.vector_store %arg10[%c2_21, %c0_22], %20 {strides = array<i32>} : memref<16x32xf32, #tpu.memory_space<vmem>>, vector<2x32xf32>,
    %c4 = arith.constant 4 : index
    %c0_23 = arith.constant 0 : index
    %22 = vector.load %arg10[%c4, %c0_23] : memref<16x32xf32, #tpu.memory_space<vmem>>, vector<2x32xf32>
    %cst_24 = arith.constant dense<0.000000e+00> : vector<2x32xf32>
    %23 = tpu.matmul %20, %9, %cst_24 {dimension_numbers = #tpu.dot_dimension_numbers<[1], [0], [0], [1], [0, 0, 1, 1], [], []>} : vector<2x32xf32>, vector<32x32xf32>, vector<2x32xf32> -> vector<2x32xf32>
    %24 = arith.addf %22, %23 : vector<2x32xf32>
    %25 = math.tanh %24 : vector<2x32xf32>
    %c4_25 = arith.constant 4 : index
    %c0_26 = arith.constant 0 : index
    %26 = vector.load %arg10[%c4_25, %c0_26] : memref<16x32xf32, #tpu.memory_space<vmem>>, vector<2x32xf32>
    tpu.vector_store %arg10[%c4_25, %c0_26], %25 {strides = array<i32>} : memref<16x32xf32, #tpu.memory_space<vmem>>, vector<2x32xf32>,
    %c6 = arith.constant 6 : index
    %c0_27 = arith.constant 0 : index
    %27 = vector.load %arg10[%c6, %c0_27] : memref<16x32xf32, #tpu.memory_space<vmem>>, vector<2x32xf32>
    %cst_28 = arith.constant dense<0.000000e+00> : vector<2x32xf32>
    %28 = tpu.matmul %25, %9, %cst_28 {dimension_numbers = #tpu.dot_dimension_numbers<[1], [0], [0], [1], [0, 0, 1, 1], [], []>} : vector<2x32xf32>, vector<32x32xf32>, vector<2x32xf32> -> vector<2x32xf32>
    %29 = arith.addf %27, %28 : vector<2x32xf32>
    %30 = math.tanh %29 : vector<2x32xf32>
    %c6_29 = arith.constant 6 : index
    %c0_30 = arith.constant 0 : index
    %31 = vector.load %arg10[%c6_29, %c0_30] : memref<16x32xf32, #tpu.memory_space<vmem>>, vector<2x32xf32>
    tpu.vector_store %arg10[%c6_29, %c0_30], %30 {strides = array<i32>} : memref<16x32xf32, #tpu.memory_space<vmem>>, vector<2x32xf32>,
    %c8 = arith.constant 8 : index
    %c0_31 = arith.constant 0 : index
    %32 = vector.load %arg10[%c8, %c0_31] : memref<16x32xf32, #tpu.memory_space<vmem>>, vector<2x32xf32>
    %cst_32 = arith.constant dense<0.000000e+00> : vector<2x32xf32>
    %33 = tpu.matmul %30, %9, %cst_32 {dimension_numbers = #tpu.dot_dimension_numbers<[1], [0], [0], [1], [0, 0, 1, 1], [], []>} : vector<2x32xf32>, vector<32x32xf32>, vector<2x32xf32> -> vector<2x32xf32>
    %34 = arith.addf %32, %33 : vector<2x32xf32>
    %35 = math.tanh %34 : vector<2x32xf32>
    %c8_33 = arith.constant 8 : index
    %c0_34 = arith.constant 0 : index
    %36 = vector.load %arg10[%c8_33, %c0_34] : memref<16x32xf32, #tpu.memory_space<vmem>>, vector<2x32xf32>
    tpu.vector_store %arg10[%c8_33, %c0_34], %35 {strides = array<i32>} : memref<16x32xf32, #tpu.memory_space<vmem>>, vector<2x32xf32>,
    %c10 = arith.constant 10 : index
    %c0_35 = arith.constant 0 : index
    %37 = vector.load %arg10[%c10, %c0_35] : memref<16x32xf32, #tpu.memory_space<vmem>>, vector<2x32xf32>
    %cst_36 = arith.constant dense<0.000000e+00> : vector<2x32xf32>
    %38 = tpu.matmul %35, %9, %cst_36 {dimension_numbers = #tpu.dot_dimension_numbers<[1], [0], [0], [1], [0, 0, 1, 1], [], []>} : vector<2x32xf32>, vector<32x32xf32>, vector<2x32xf32> -> vector<2x32xf32>
    %39 = arith.addf %37, %38 : vector<2x32xf32>
    %40 = math.tanh %39 : vector<2x32xf32>
    %c10_37 = arith.constant 10 : index
    %c0_38 = arith.constant 0 : index
    %41 = vector.load %arg10[%c10_37, %c0_38] : memref<16x32xf32, #tpu.memory_space<vmem>>, vector<2x32xf32>
    tpu.vector_store %arg10[%c10_37, %c0_38], %40 {strides = array<i32>} : memref<16x32xf32, #tpu.memory_space<vmem>>, vector<2x32xf32>,
    %c12 = arith.constant 12 : index
    %c0_39 = arith.constant 0 : index
    %42 = vector.load %arg10[%c12, %c0_39] : memref<16x32xf32, #tpu.memory_space<vmem>>, vector<2x32xf32>
    %cst_40 = arith.constant dense<0.000000e+00> : vector<2x32xf32>
    %43 = tpu.matmul %40, %9, %cst_40 {dimension_numbers = #tpu.dot_dimension_numbers<[1], [0], [0], [1], [0, 0, 1, 1], [], []>} : vector<2x32xf32>, vector<32x32xf32>, vector<2x32xf32> -> vector<2x32xf32>
    %44 = arith.addf %42, %43 : vector<2x32xf32>
    %45 = math.tanh %44 : vector<2x32xf32>
    %c12_41 = arith.constant 12 : index
    %c0_42 = arith.constant 0 : index
    %46 = vector.load %arg10[%c12_41, %c0_42] : memref<16x32xf32, #tpu.memory_space<vmem>>, vector<2x32xf32>
    tpu.vector_store %arg10[%c12_41, %c0_42], %45 {strides = array<i32>} : memref<16x32xf32, #tpu.memory_space<vmem>>, vector<2x32xf32>,
    %c14 = arith.constant 14 : index
    %c0_43 = arith.constant 0 : index
    %47 = vector.load %arg10[%c14, %c0_43] : memref<16x32xf32, #tpu.memory_space<vmem>>, vector<2x32xf32>
    %cst_44 = arith.constant dense<0.000000e+00> : vector<2x32xf32>
    %48 = tpu.matmul %45, %9, %cst_44 {dimension_numbers = #tpu.dot_dimension_numbers<[1], [0], [0], [1], [0, 0, 1, 1], [], []>} : vector<2x32xf32>, vector<32x32xf32>, vector<2x32xf32> -> vector<2x32xf32>
    %49 = arith.addf %47, %48 : vector<2x32xf32>
    %50 = math.tanh %49 : vector<2x32xf32>
    %c14_45 = arith.constant 14 : index
    %c0_46 = arith.constant 0 : index
    %51 = vector.load %arg10[%c14_45, %c0_46] : memref<16x32xf32, #tpu.memory_space<vmem>>, vector<2x32xf32>
    tpu.vector_store %arg10[%c14_45, %c0_46], %50 {strides = array<i32>} : memref<16x32xf32, #tpu.memory_space<vmem>>, vector<2x32xf32>,
    %c0_47 = arith.constant 0 : index
    %c0_48 = arith.constant 0 : index
    %c0_49 = arith.constant 0 : index
    %52 = vector.load %arg9[%c0_47, %c0_48, %c0_49] : memref<2x2x32xf32, #tpu.memory_space<vmem>>, vector<1x2x32xf32>
    %53 = vector.shape_cast %52 : vector<1x2x32xf32> to vector<2x32xf32>
    %54 = vector.shape_cast %50 : vector<2x32xf32> to vector<1x2x32xf32>
    tpu.vector_store %arg9[%c0_47, %c0_48, %c0_49], %54 {strides = array<i32>} : memref<2x2x32xf32, #tpu.memory_space<vmem>>, vector<1x2x32xf32>,
    %c0_50 = arith.constant 0 : index
    %c0_51 = arith.constant 0 : index
    %55 = vector.load %arg10[%c0_50, %c0_51] : memref<16x32xf32, #tpu.memory_space<vmem>>, vector<16x32xf32>
    %c0_52 = arith.constant 0 : index
    %c0_53 = arith.constant 0 : index
    %c0_54 = arith.constant 0 : index
    %56 = vector.load %arg3[%c0_52, %c0_53, %c0_54] : memref<1x32x32xf32, #tpu.memory_space<vmem>>, vector<1x32x32xf32>
    %57 = vector.shape_cast %56 : vector<1x32x32xf32> to vector<32x32xf32>
    %cst_55 = arith.constant dense<0.000000e+00> : vector<16x32xf32>
    %58 = tpu.matmul %55, %57, %cst_55 {dimension_numbers = #tpu.dot_dimension_numbers<[1], [0], [0], [1], [0, 0, 1, 1], [], []>} : vector<16x32xf32>, vector<32x32xf32>, vector<16x32xf32> -> vector<16x32xf32>
    %c1 = arith.constant 1 : index
    %c0_56 = arith.constant 0 : index
    %c0_57 = arith.constant 0 : index
    %59 = vector.load %arg5[%c1, %c0_56, %c0_57] : memref<2x1x32xf32, #tpu.memory_space<vmem>>, vector<1x1x32xf32>
    %60 = vector.shape_cast %59 : vector<1x1x32xf32> to vector<1x32xf32>
    %61 = vector.broadcast %60 : vector<1x32xf32> to vector<16x32xf32>
    %62 = arith.addf %58, %61 : vector<16x32xf32>
    %c0_58 = arith.constant 0 : index
    %c0_59 = arith.constant 0 : index
    %63 = vector.load %arg10[%c0_58, %c0_59] : memref<16x32xf32, #tpu.memory_space<vmem>>, vector<16x32xf32>
    tpu.vector_store %arg10[%c0_58, %c0_59], %62 {strides = array<i32>} : memref<16x32xf32, #tpu.memory_space<vmem>>, vector<16x32xf32>,
    %c1_60 = arith.constant 1 : index
    %c0_61 = arith.constant 0 : index
    %c0_62 = arith.constant 0 : index
    %64 = vector.load %arg4[%c1_60, %c0_61, %c0_62] : memref<2x32x32xf32, #tpu.memory_space<vmem>>, vector<1x32x32xf32>
    %65 = vector.shape_cast %64 : vector<1x32x32xf32> to vector<32x32xf32>
    %c1_63 = arith.constant 1 : index
    %c0_64 = arith.constant 0 : index
    %c0_65 = arith.constant 0 : index
    %66 = vector.load %arg1[%c1_63, %c0_64, %c0_65] : memref<2x2x32xf32, #tpu.memory_space<vmem>>, vector<1x2x32xf32>
    %67 = vector.shape_cast %66 : vector<1x2x32xf32> to vector<2x32xf32>
    %c0_66 = arith.constant 0 : index
    %c0_67 = arith.constant 0 : index
    %68 = vector.load %arg10[%c0_66, %c0_67] : memref<16x32xf32, #tpu.memory_space<vmem>>, vector<2x32xf32>
    %cst_68 = arith.constant dense<0.000000e+00> : vector<2x32xf32>
    %69 = tpu.matmul %67, %65, %cst_68 {dimension_numbers = #tpu.dot_dimension_numbers<[1], [0], [0], [1], [0, 0, 1, 1], [], []>} : vector<2x32xf32>, vector<32x32xf32>, vector<2x32xf32> -> vector<2x32xf32>
    %70 = arith.addf %68, %69 : vector<2x32xf32>
    %71 = math.tanh %70 : vector<2x32xf32>
    %c0_69 = arith.constant 0 : index
    %c0_70 = arith.constant 0 : index
    %72 = vector.load %arg10[%c0_69, %c0_70] : memref<16x32xf32, #tpu.memory_space<vmem>>, vector<2x32xf32>
    tpu.vector_store %arg10[%c0_69, %c0_70], %71 {strides = array<i32>} : memref<16x32xf32, #tpu.memory_space<vmem>>, vector<2x32xf32>,
    %c2_71 = arith.constant 2 : index
    %c0_72 = arith.constant 0 : index
    %73 = vector.load %arg10[%c2_71, %c0_72] : memref<16x32xf32, #tpu.memory_space<vmem>>, vector<2x32xf32>
    %cst_73 = arith.constant dense<0.000000e+00> : vector<2x32xf32>
    %74 = tpu.matmul %71, %65, %cst_73 {dimension_numbers = #tpu.dot_dimension_numbers<[1], [0], [0], [1], [0, 0, 1, 1], [], []>} : vector<2x32xf32>, vector<32x32xf32>, vector<2x32xf32> -> vector<2x32xf32>
    %75 = arith.addf %73, %74 : vector<2x32xf32>
    %76 = math.tanh %75 : vector<2x32xf32>
    %c2_74 = arith.constant 2 : index
    %c0_75 = arith.constant 0 : index
    %77 = vector.load %arg10[%c2_74, %c0_75] : memref<16x32xf32, #tpu.memory_space<vmem>>, vector<2x32xf32>
    tpu.vector_store %arg10[%c2_74, %c0_75], %76 {strides = array<i32>} : memref<16x32xf32, #tpu.memory_space<vmem>>, vector<2x32xf32>,
    %c4_76 = arith.constant 4 : index
    %c0_77 = arith.constant 0 : index
    %78 = vector.load %arg10[%c4_76, %c0_77] : memref<16x32xf32, #tpu.memory_space<vmem>>, vector<2x32xf32>
    %cst_78 = arith.constant dense<0.000000e+00> : vector<2x32xf32>
    %79 = tpu.matmul %76, %65, %cst_78 {dimension_numbers = #tpu.dot_dimension_numbers<[1], [0], [0], [1], [0, 0, 1, 1], [], []>} : vector<2x32xf32>, vector<32x32xf32>, vector<2x32xf32> -> vector<2x32xf32>
    %80 = arith.addf %78, %79 : vector<2x32xf32>
    %81 = math.tanh %80 : vector<2x32xf32>
    %c4_79 = arith.constant 4 : index
    %c0_80 = arith.constant 0 : index
    %82 = vector.load %arg10[%c4_79, %c0_80] : memref<16x32xf32, #tpu.memory_space<vmem>>, vector<2x32xf32>
    tpu.vector_store %arg10[%c4_79, %c0_80], %81 {strides = array<i32>} : memref<16x32xf32, #tpu.memory_space<vmem>>, vector<2x32xf32>,
    %c6_81 = arith.constant 6 : index
    %c0_82 = arith.constant 0 : index
    %83 = vector.load %arg10[%c6_81, %c0_82] : memref<16x32xf32, #tpu.memory_space<vmem>>, vector<2x32xf32>
    %cst_83 = arith.constant dense<0.000000e+00> : vector<2x32xf32>
    %84 = tpu.matmul %81, %65, %cst_83 {dimension_numbers = #tpu.dot_dimension_numbers<[1], [0], [0], [1], [0, 0, 1, 1], [], []>} : vector<2x32xf32>, vector<32x32xf32>, vector<2x32xf32> -> vector<2x32xf32>
    %85 = arith.addf %83, %84 : vector<2x32xf32>
    %86 = math.tanh %85 : vector<2x32xf32>
    %c6_84 = arith.constant 6 : index
    %c0_85 = arith.constant 0 : index
    %87 = vector.load %arg10[%c6_84, %c0_85] : memref<16x32xf32, #tpu.memory_space<vmem>>, vector<2x32xf32>
    tpu.vector_store %arg10[%c6_84, %c0_85], %86 {strides = array<i32>} : memref<16x32xf32, #tpu.memory_space<vmem>>, vector<2x32xf32>,
    %c8_86 = arith.constant 8 : index
    %c0_87 = arith.constant 0 : index
    %88 = vector.load %arg10[%c8_86, %c0_87] : memref<16x32xf32, #tpu.memory_space<vmem>>, vector<2x32xf32>
    %cst_88 = arith.constant dense<0.000000e+00> : vector<2x32xf32>
    %89 = tpu.matmul %86, %65, %cst_88 {dimension_numbers = #tpu.dot_dimension_numbers<[1], [0], [0], [1], [0, 0, 1, 1], [], []>} : vector<2x32xf32>, vector<32x32xf32>, vector<2x32xf32> -> vector<2x32xf32>
    %90 = arith.addf %88, %89 : vector<2x32xf32>
    %91 = math.tanh %90 : vector<2x32xf32>
    %c8_89 = arith.constant 8 : index
    %c0_90 = arith.constant 0 : index
    %92 = vector.load %arg10[%c8_89, %c0_90] : memref<16x32xf32, #tpu.memory_space<vmem>>, vector<2x32xf32>
    tpu.vector_store %arg10[%c8_89, %c0_90], %91 {strides = array<i32>} : memref<16x32xf32, #tpu.memory_space<vmem>>, vector<2x32xf32>,
    %c10_91 = arith.constant 10 : index
    %c0_92 = arith.constant 0 : index
    %93 = vector.load %arg10[%c10_91, %c0_92] : memref<16x32xf32, #tpu.memory_space<vmem>>, vector<2x32xf32>
    %cst_93 = arith.constant dense<0.000000e+00> : vector<2x32xf32>
    %94 = tpu.matmul %91, %65, %cst_93 {dimension_numbers = #tpu.dot_dimension_numbers<[1], [0], [0], [1], [0, 0, 1, 1], [], []>} : vector<2x32xf32>, vector<32x32xf32>, vector<2x32xf32> -> vector<2x32xf32>
    %95 = arith.addf %93, %94 : vector<2x32xf32>
    %96 = math.tanh %95 : vector<2x32xf32>
    %c10_94 = arith.constant 10 : index
    %c0_95 = arith.constant 0 : index
    %97 = vector.load %arg10[%c10_94, %c0_95] : memref<16x32xf32, #tpu.memory_space<vmem>>, vector<2x32xf32>
    tpu.vector_store %arg10[%c10_94, %c0_95], %96 {strides = array<i32>} : memref<16x32xf32, #tpu.memory_space<vmem>>, vector<2x32xf32>,
    %c12_96 = arith.constant 12 : index
    %c0_97 = arith.constant 0 : index
    %98 = vector.load %arg10[%c12_96, %c0_97] : memref<16x32xf32, #tpu.memory_space<vmem>>, vector<2x32xf32>
    %cst_98 = arith.constant dense<0.000000e+00> : vector<2x32xf32>
    %99 = tpu.matmul %96, %65, %cst_98 {dimension_numbers = #tpu.dot_dimension_numbers<[1], [0], [0], [1], [0, 0, 1, 1], [], []>} : vector<2x32xf32>, vector<32x32xf32>, vector<2x32xf32> -> vector<2x32xf32>
    %100 = arith.addf %98, %99 : vector<2x32xf32>
    %101 = math.tanh %100 : vector<2x32xf32>
    %c12_99 = arith.constant 12 : index
    %c0_100 = arith.constant 0 : index
    %102 = vector.load %arg10[%c12_99, %c0_100] : memref<16x32xf32, #tpu.memory_space<vmem>>, vector<2x32xf32>
    tpu.vector_store %arg10[%c12_99, %c0_100], %101 {strides = array<i32>} : memref<16x32xf32, #tpu.memory_space<vmem>>, vector<2x32xf32>,
    %c14_101 = arith.constant 14 : index
    %c0_102 = arith.constant 0 : index
    %103 = vector.load %arg10[%c14_101, %c0_102] : memref<16x32xf32, #tpu.memory_space<vmem>>, vector<2x32xf32>
    %cst_103 = arith.constant dense<0.000000e+00> : vector<2x32xf32>
    %104 = tpu.matmul %101, %65, %cst_103 {dimension_numbers = #tpu.dot_dimension_numbers<[1], [0], [0], [1], [0, 0, 1, 1], [], []>} : vector<2x32xf32>, vector<32x32xf32>, vector<2x32xf32> -> vector<2x32xf32>
    %105 = arith.addf %103, %104 : vector<2x32xf32>
    %106 = math.tanh %105 : vector<2x32xf32>
    %c14_104 = arith.constant 14 : index
    %c0_105 = arith.constant 0 : index
    %107 = vector.load %arg10[%c14_104, %c0_105] : memref<16x32xf32, #tpu.memory_space<vmem>>, vector<2x32xf32>
    tpu.vector_store %arg10[%c14_104, %c0_105], %106 {strides = array<i32>} : memref<16x32xf32, #tpu.memory_space<vmem>>, vector<2x32xf32>,
    %c1_106 = arith.constant 1 : index
    %c0_107 = arith.constant 0 : index
    %c0_108 = arith.constant 0 : index
    %108 = vector.load %arg9[%c1_106, %c0_107, %c0_108] : memref<2x2x32xf32, #tpu.memory_space<vmem>>, vector<1x2x32xf32>
    %109 = vector.shape_cast %108 : vector<1x2x32xf32> to vector<2x32xf32>
    %110 = vector.shape_cast %106 : vector<2x32xf32> to vector<1x2x32xf32>
    tpu.vector_store %arg9[%c1_106, %c0_107, %c0_108], %110 {strides = array<i32>} : memref<2x2x32xf32, #tpu.memory_space<vmem>>, vector<1x2x32xf32>,
    %c0_109 = arith.constant 0 : index
    %c0_110 = arith.constant 0 : index
    %111 = vector.load %arg10[%c0_109, %c0_110] : memref<16x32xf32, #tpu.memory_space<vmem>>, vector<16x32xf32>
    %c0_111 = arith.constant 0 : index
    %c0_112 = arith.constant 0 : index
    %112 = vector.load %arg6[%c0_111, %c0_112] : memref<32x128xf32, #tpu.memory_space<vmem>>, vector<32x128xf32>
    %cst_113 = arith.constant dense<0.000000e+00> : vector<16x128xf32>
    %113 = tpu.matmul %111, %112, %cst_113 {dimension_numbers = #tpu.dot_dimension_numbers<[1], [0], [0], [1], [0, 0, 1, 1], [], []>} : vector<16x32xf32>, vector<32x128xf32>, vector<16x128xf32> -> vector<16x128xf32>
    %c0_114 = arith.constant 0 : index
    %c0_115 = arith.constant 0 : index
    %114 = vector.load %arg7[%c0_114, %c0_115] : memref<1x128xf32, #tpu.memory_space<vmem>>, vector<1x128xf32>
    %115 = vector.broadcast %114 : vector<1x128xf32> to vector<16x128xf32>
    %116 = arith.addf %113, %115 : vector<16x128xf32>
    %c0_116 = arith.constant 0 : index
    %c0_117 = arith.constant 0 : index
    %117 = vector.load %arg8[%c0_116, %c0_117] : memref<16x128xf32, #tpu.memory_space<vmem>>, vector<16x128xf32>
    tpu.vector_store %arg8[%c0_116, %c0_117], %116 {strides = array<i32>} : memref<16x128xf32, #tpu.memory_space<vmem>>, vector<16x128xf32>,
    return
  }
}

</mosaic_0001>

<bundles_post_ra>
// kernel: rnn_regressor_forward.1
= control target key start
LH: loop header
LB: loop body
LE: loop exit
PB: predicated region body
PF: predicated region fallthrough
CT: control target
= control target key end

     0   :  { %vm49_vm0 = vcmask 1043456   ;;  %vm42_vm1 = vcmask 31744   ;;  %v1981_v4 = vmov 0.0   ;;  %s2335_s0 = inlined_call_operand.vmem [shape: f32[16,4], index: 0, kind: input, shape index: {}]   ;;  %s2336_s1 = inlined_call_operand.vmem [shape: f32[2,2,32], index: 1, kind: input, shape index: {}]   ;;  %s2337_s2 = inlined_call_operand.vmem [shape: f32[4,32], index: 2, kind: input, shape index: {}]   ;;  %s2338_s3 = inlined_call_operand.vmem [shape: f32[1,32,32], index: 3, kind: input, shape index: {}]   ;;  %s2339_s4 = inlined_call_operand.vmem [shape: f32[2,32,32], index: 4, kind: input, shape index: {}]   ;;  %s2340_s5 = inlined_call_operand.vmem [shape: f32[2,1,32], index: 5, kind: input, shape index: {}]   ;;  %s2341_s6 = inlined_call_operand.vmem [shape: f32[32,128], index: 6, kind: input, shape index: {}]   ;;  %s2342_s7 = inlined_call_operand.vmem [shape: f32[1,128], index: 7, kind: input, shape index: {}]   ;;  %s2343_s8 = inlined_call_operand.vmem [shape: f32[16,128], index: 8, kind: output, shape index: {0}]   ;;  %s2344_s9 = inlined_call_operand.hbm [shape: f32[2,2,32], index: 9, kind: output, shape index: {1}]  }
   0x1   :  { %v34_v0 = vld [vmem:[%s2337_s2] sm:$0xf]  ;;  %v33_v2 = vld [vmem:[%s2335_s0 + $0x8] sm:$0xff]  ;;  %v2048_v3 = vld [vmem:[%s2339_s4 + $0x18] sm:$0xff]  ;;  %1724 = vmatprep.subr.mxu1 %v1981_v4 }
   0x2   :  { %v32_v1 = vld [vmem:[%s2335_s0] sm:$0xff]  ;;  %1719 = vmatprep.subr.msk.mxu0 %vm49_vm0, %v34_v0  ;;  %v2054_v5 = vld [vmem:[%s2339_s4 + $0x10] sm:$0xff] }
   0x3   :  { %1721 = vmatprep.mubr.msk.f32.mxu0 %vm42_vm1, %v32_v1  ;;  %1720 = vmatpush3.msk.msra.mxu0 %vm49_vm0, %v34_v0 }
   0x4   :  { %15 = vsyncpa [#allocation4], 0  ;;  %1722 = vmatmul.mubr.msk.f32.vlgmr.msra.gmra.mxu0 %vm42_vm1, %v33_v2  ;;  %1725 = vmatpush3.msra.mxu1 %v2048_v3  ;;  %v2061_v6 = vld [vmem:[%s2339_s4 + $0x8] sm:$0xff]  ;;  %vm1982_vm2 = vmmov 0   ;;  %v2071_v7 = vld [vmem:[%s2339_s4] sm:$0xff]  ;;  %vm128_vm3 = vcmask 261120  }
   0x5   :  { %1726 = vmatprep.subr.mxu1 %v1981_v4  ;;  %1732 = vmatprep.mubr.msk.f32.mxu1 %vm1982_vm2, %v1981_v4  ;;  %v135_v8 = vld [vmem:[%s2336_s1] sm:$0x3]  ;;  %vm212_vm4 = vcmask 254976   ;;  %v759_v50 = vld [vmem:[%s2338_s3 + $0x18] sm:$0xff]  ;;  %v758_v51 = vld [vmem:[%s2338_s3 + $0x10] sm:$0xff]  ;;  %s1983_s26 = smov [#allocation3]  }
   0x6   :  { %1727 = vmatpush3.msra.mxu1 %v2054_v5  ;;  %1735 = vmatprep.subr.mxu0 %v1981_v4  ;;  %v1592_v9 = vld [vmem:[%s2340_s5] ss:$0 sm:$0xff]  ;;  %v757_v52 = vld [vmem:[%s2338_s3 + $0x8] sm:$0xff]  ;;  %v2187_v54 = vld [vmem:[%s2339_s4 + $0x38] sm:$0xff]  ;;  %s1579_s27 = sshll.u32 %s1983_s26, 4  ;;  %s1580_s27 = int_to_ptr.vmem [resolvable:$true] %s1579_s27 }
   0x7   :  { %1728 = vmatprep.subr.mxu1 %v1981_v4  ;;  %1736 = vmatpush3.msra.mxu0 %v2048_v3  ;;  %v756_v53 = vld [vmem:[%s2338_s3] sm:$0xff]  ;;  %v2192_v55 = vld [vmem:[%s2339_s4 + $0x30] sm:$0xff]  ;;  %v2200_v56 = vld [vmem:[%s2339_s4 + $0x28] sm:$0xff]  ;;  %p1964_p1 = scmp.lt.s32.totalorder %s1580_s27, %s1580_s27 }
   0x8   :  { %1729 = vmatpush3.msra.mxu1 %v2061_v6  ;;  %1737 = vmatprep.subr.mxu0 %v1981_v4  ;;  %v2207_v57 = vld [vmem:[%s2339_s4 + $0x20] sm:$0xff] }
   0x9   :  { %1730 = vmatprep.subr.mxu1 %v1981_v4  ;;  %1738 = vmatpush3.msra.mxu0 %v2054_v5  ;;  %v1612_v58 = vld [vmem:[%s2336_s1 + $0x2] sm:$0x3] }
   0xa   :  { %1731 = vmatpush3.msra.mxu1 %v2071_v7  ;;  %1739 = vmatprep.subr.mxu0 %v1981_v4 }
   0xb   :  { %1733 = vmatmul.mubr.msk.f32.vlgmr.msra.gmra.mxu1 %vm128_vm3, %v135_v8  ;;  %1740 = vmatpush3.msra.mxu0 %v2061_v6 }
   0xc   :  { %1741 = vmatprep.subr.mxu0 %v1981_v4  ;;  %1743 = vmatprep.mubr.msk.f32.mxu0 %vm1982_vm2, %v1981_v4 }
   0xd   :  { %1742 = vmatpush3.msra.mxu0 %v2071_v7  ;;  %1746 = vmatprep.subr.mxu1 %v1981_v4 }
   0xe   :  { %1747 = vmatpush3.msra.mxu1 %v2048_v3  ;;  %1754 = vmatprep.mubr.msk.f32.mxu1 %vm1982_vm2, %v1981_v4 }
   0xf   :  { %1748 = vmatprep.subr.mxu1 %v1981_v4  ;;  %1757 = vmatprep.subr.mxu0 %v1981_v4 }
  0x10   :  { %1749 = vmatpush3.msra.mxu1 %v2054_v5 }
  0x11   :  { %1750 = vmatprep.subr.mxu1 %v1981_v4 }
  0x12   :  { %1751 = vmatpush3.msra.mxu1 %v2061_v6 }
  0x13   :  { %1752 = vmatprep.subr.mxu1 %v1981_v4 }
  0x14   :  { %1753 = vmatpush3.msra.mxu1 %v2071_v7 }
  0x15   :  { %1768 = vmatprep.subr.mxu1 %v1981_v4 }
  0xc4   :  { %v1723_v10 = vpop.f32.mrf.mxu0 }
  0xc5   :  { %v125_v11 = vadd.f32 %v1723_v10, %v1592_v9 }
  0xc6   :  { %v119_v12 = vpop.f32.mrf.mxu0 }
  0xc7   :  { %130 = vst.msk [vmem:[#allocation2 + $0x8] sm:$0xff] %vm128_vm3, %v125_v11  ;;  %v120_v13 = vadd.f32 %v1592_v9, %v119_v12 }
  0xc9   :  { %129 = vst.msk [vmem:[#allocation2] sm:$0xff] %vm128_vm3, %v120_v13 }
  0xcb   :  { %v206_v14 = vpop.f32.mrf.mxu1 }
  0xcd   :  { %v1734_v15 = vpop.f32.mrf.mxu1 }
  0xce   :  { %v445_v34 = vld [vmem:[#allocation2 + $0x8] sm:$0x3]  ;;  %v522_v39 = vld [vmem:[#allocation2 + $0xa] sm:$0x3]  ;;  %v599_v45 = vld [vmem:[#allocation2 + $0xc] sm:$0x3] }
  0xcf   :  { %v676_v59 = vld [vmem:[#allocation2 + $0xe] sm:$0x3] }
  0xd0   :  { %v136_v16 = vld [vmem:[#allocation2] sm:$0x3]  ;;  %v214_v19 = vld [vmem:[#allocation2 + $0x2] sm:$0x3]  ;;  %v291_v24 = vld [vmem:[#allocation2 + $0x4] sm:$0x3] }
  0xd1   :  { %v210_v17 = vadd.f32 %v206_v14, %v136_v16  ;;  %v368_v29 = vld [vmem:[#allocation2 + $0x6] sm:$0x3] }
  0xd3   :  { %1927 = vtanh.f32 %v210_v17 }
  0xe0   :  { %v1928_v18 = vpop.eup %1927 }
  0xe1   :  { %213 = vst.msk [vmem:[#allocation2] sm:$0x3] %vm212_vm4, %v1928_v18  ;;  %1744 = vmatmul.mubr.msk.f32.vlgmr.msra.gmra.mxu0 %vm128_vm3, %v1928_v18 }
  0xe2   :  { %1758 = vmatpush3.msra.mxu0 %v2048_v3  ;;  %1765 = vmatprep.mubr.msk.f32.mxu0 %vm1982_vm2, %v1981_v4 }
  0xe3   :  { %1759 = vmatprep.subr.mxu0 %v1981_v4 }
  0xe4   :  { %1760 = vmatpush3.msra.mxu0 %v2054_v5 }
  0xe5   :  { %1761 = vmatprep.subr.mxu0 %v1981_v4 }
  0xe6   :  { %1762 = vmatpush3.msra.mxu0 %v2061_v6 }
  0xe7   :  { %1763 = vmatprep.subr.mxu0 %v1981_v4 }
  0xe8   :  { %1764 = vmatpush3.msra.mxu0 %v2071_v7 }
  0xe9   :  { %1779 = vmatprep.subr.mxu0 %v1981_v4 }
 0x1a1   :  { %v284_v20 = vpop.f32.mrf.mxu0 }
 0x1a2   :  { %v288_v21 = vadd.f32 %v284_v20, %v214_v19 }
 0x1a3   :  { %v1745_v22 = vpop.f32.mrf.mxu0 }
 0x1a4   :  { %1929 = vtanh.f32 %v288_v21 }
 0x1b1   :  { %v1930_v23 = vpop.eup %1929 }
 0x1b2   :  { %290 = vst.msk [vmem:[#allocation2 + $0x2] sm:$0x3] %vm212_vm4, %v1930_v23  ;;  %1755 = vmatmul.mubr.msk.f32.vlgmr.msra.gmra.mxu1 %vm128_vm3, %v1930_v23 }
 0x1b3   :  { %1769 = vmatpush3.msra.mxu1 %v2048_v3  ;;  %1776 = vmatprep.mubr.msk.f32.mxu1 %vm1982_vm2, %v1981_v4 }
 0x1b4   :  { %1770 = vmatprep.subr.mxu1 %v1981_v4 }
 0x1b5   :  { %1771 = vmatpush3.msra.mxu1 %v2054_v5 }
 0x1b6   :  { %1772 = vmatprep.subr.mxu1 %v1981_v4 }
 0x1b7   :  { %1773 = vmatpush3.msra.mxu1 %v2061_v6 }
 0x1b8   :  { %1774 = vmatprep.subr.mxu1 %v1981_v4 }
 0x1b9   :  { %1775 = vmatpush3.msra.mxu1 %v2071_v7 }
 0x1ba   :  { %1790 = vmatprep.subr.mxu1 %v1981_v4 }
 0x272   :  { %v361_v25 = vpop.f32.mrf.mxu1 }
 0x273   :  { %v365_v26 = vadd.f32 %v361_v25, %v291_v24 }
 0x274   :  { %v1756_v27 = vpop.f32.mrf.mxu1 }
 0x275   :  { %1931 = vtanh.f32 %v365_v26 }
 0x282   :  { %v1932_v28 = vpop.eup %1931 }
 0x283   :  { %367 = vst.msk [vmem:[#allocation2 + $0x4] sm:$0x3] %vm212_vm4, %v1932_v28  ;;  %1766 = vmatmul.mubr.msk.f32.vlgmr.msra.gmra.mxu0 %vm128_vm3, %v1932_v28 }
 0x284   :  { %1780 = vmatpush3.msra.mxu0 %v2048_v3  ;;  %1787 = vmatprep.mubr.msk.f32.mxu0 %vm1982_vm2, %v1981_v4 }
 0x285   :  { %1781 = vmatprep.subr.mxu0 %v1981_v4 }
 0x286   :  { %1782 = vmatpush3.msra.mxu0 %v2054_v5 }
 0x287   :  { %1783 = vmatprep.subr.mxu0 %v1981_v4 }
 0x288   :  { %1784 = vmatpush3.msra.mxu0 %v2061_v6 }
 0x289   :  { %1785 = vmatprep.subr.mxu0 %v1981_v4 }
 0x28a   :  { %1786 = vmatpush3.msra.mxu0 %v2071_v7 }
 0x28b   :  { %1801 = vmatprep.subr.mxu0 %v1981_v4 }
 0x343   :  { %v438_v30 = vpop.f32.mrf.mxu0 }
 0x344   :  { %v442_v31 = vadd.f32 %v438_v30, %v368_v29 }
 0x345   :  { %v1767_v32 = vpop.f32.mrf.mxu0 }
 0x346   :  { %1933 = vtanh.f32 %v442_v31 }
 0x353   :  { %v1934_v33 = vpop.eup %1933 }
 0x354   :  { %444 = vst.msk [vmem:[#allocation2 + $0x6] sm:$0x3] %vm212_vm4, %v1934_v33  ;;  %1777 = vmatmul.mubr.msk.f32.vlgmr.msra.gmra.mxu1 %vm128_vm3, %v1934_v33 }
 0x355   :  { %1791 = vmatpush3.msra.mxu1 %v2048_v3  ;;  %1798 = vmatprep.mubr.msk.f32.mxu1 %vm1982_vm2, %v1981_v4 }
 0x356   :  { %1792 = vmatprep.subr.mxu1 %v1981_v4 }
 0x357   :  { %1793 = vmatpush3.msra.mxu1 %v2054_v5 }
 0x358   :  { %1794 = vmatprep.subr.mxu1 %v1981_v4 }
 0x359   :  { %1795 = vmatpush3.msra.mxu1 %v2061_v6 }
 0x35a   :  { %1796 = vmatprep.subr.mxu1 %v1981_v4 }
 0x35b   :  { %1797 = vmatpush3.msra.mxu1 %v2071_v7  ;;  %v754_v44 = vld [vmem:[#allocation2] sm:$0xff] }
 0x35c   :  { %1812 = vmatprep.subr.mxu1 %v759_v50 }
 0x414   :  { %v515_v35 = vpop.f32.mrf.mxu1 }
 0x415   :  { %v519_v36 = vadd.f32 %v515_v35, %v445_v34 }
 0x416   :  { %v1778_v37 = vpop.f32.mrf.mxu1 }
 0x417   :  { %1935 = vtanh.f32 %v519_v36 }
 0x424   :  { %v1936_v38 = vpop.eup %1935 }
 0x425   :  { %521 = vst.msk [vmem:[#allocation2 + $0x8] sm:$0x3] %vm212_vm4, %v1936_v38  ;;  %1788 = vmatmul.mubr.msk.f32.vlgmr.msra.gmra.mxu0 %vm128_vm3, %v1936_v38 }
 0x426   :  { %1802 = vmatpush3.msra.mxu0 %v2048_v3  ;;  %1809 = vmatprep.mubr.msk.f32.mxu0 %vm1982_vm2, %v1981_v4  ;;  %v1605_v3 = vld [vmem:[%s2340_s5 + $0x1] ss:$0 sm:$0xff] }
 0x427   :  { %1803 = vmatprep.subr.mxu0 %v1981_v4 }
 0x428   :  { %1804 = vmatpush3.msra.mxu0 %v2054_v5 }
 0x429   :  { %1805 = vmatprep.subr.mxu0 %v1981_v4 }
 0x42a   :  { %1806 = vmatpush3.msra.mxu0 %v2061_v6 }
 0x42b   :  { %1807 = vmatprep.subr.mxu0 %v1981_v4 }
 0x42c   :  { %1808 = vmatpush3.msra.mxu0 %v2071_v7 }
 0x42d   :  { %1823 = vmatprep.subr.mxu0 %v1981_v4 }
 0x4e5   :  { %v592_v40 = vpop.f32.mrf.mxu0 }
 0x4e6   :  { %v596_v41 = vadd.f32 %v592_v40, %v522_v39 }
 0x4e7   :  { %v1789_v42 = vpop.f32.mrf.mxu0 }
 0x4e8   :  { %1937 = vtanh.f32 %v596_v41  ;;  %v1481_v42 = vld [vmem:[%s2341_s6 + $0x18] sm:$0xff] }
 0x4f5   :  { %v1938_v43 = vpop.eup %1937 }
 0x4f6   :  { %598 = vst.msk [vmem:[#allocation2 + $0xa] sm:$0x3] %vm212_vm4, %v1938_v43  ;;  %1799 = vmatmul.mubr.msk.f32.vlgmr.msra.gmra.mxu1 %vm128_vm3, %v1938_v43  ;;  %v1480_v43 = vld [vmem:[%s2341_s6 + $0x10] sm:$0xff] }
 0x4f7   :  { %1820 = vmatprep.mubr.msk.f32.mxu1 %vm128_vm3, %v754_v44  ;;  %1813 = vmatpush3.msra.mxu1 %v759_v50  ;;  %v1479_v44 = vld [vmem:[%s2341_s6 + $0x8] sm:$0xff] }
 0x4f8   :  { %1814 = vmatprep.subr.mxu1 %v758_v51 }
 0x4f9   :  { %1815 = vmatpush3.msra.mxu1 %v758_v51 }
 0x4fa   :  { %1816 = vmatprep.subr.mxu1 %v757_v52 }
 0x4fb   :  { %1817 = vmatpush3.msra.mxu1 %v757_v52 }
 0x4fc   :  { %1818 = vmatprep.subr.mxu1 %v756_v53 }
 0x4fd   :  { %1819 = vmatpush3.msra.mxu1 %v756_v53 }
 0x4fe   :  { %1834 = vmatprep.subr.mxu1 %v1981_v4 }
 0x5b6   :  { %v669_v46 = vpop.f32.mrf.mxu1 }
 0x5b7   :  { %v673_v47 = vadd.f32 %v669_v46, %v599_v45  ;;  %v1478_v45 = vld [vmem:[%s2341_s6] sm:$0xff]  ;;  %s1959_s6 = scalar_lea.vmem %s1580_s27, 64 }
 0x5b8   :  { %v1800_v48 = vpop.f32.mrf.mxu1  ;;  %p1960_p0 = scmp.ne.s32.totalorder %s1580_s27, %s1959_s6  ;;  %p1965_p2 = scmp.lt.s32.totalorder %s1959_s6, %s1959_s6 }
 0x5b9   :  { %1939 = vtanh.f32 %v673_v47 }
 0x5ba   :  { %p1966_p3 = por %p1965_p2, %p1964_p1 }
 0x5bc   :  { %p1967_p4 = pnand %p1966_p3, %p1960_p0 }
 0x5c6   :  { %v1940_v49 = vpop.eup %1939 }
 0x5c7   :  { %675 = vst.msk [vmem:[#allocation2 + $0xc] sm:$0x3] %vm212_vm4, %v1940_v49  ;;  %1810 = vmatmul.mubr.msk.f32.vlgmr.msra.gmra.mxu0 %vm128_vm3, %v1940_v49 }
 0x5c8   :  { %1831 = vmatprep.mubr.msk.f32.mxu0 %vm1982_vm2, %v1981_v4  ;;  %1824 = vmatpush3.msra.mxu0 %v2187_v54 }
 0x5c9   :  { %1825 = vmatprep.subr.mxu0 %v1981_v4 }
 0x5ca   :  { %1826 = vmatpush3.msra.mxu0 %v2192_v55 }
 0x5cb   :  { %1827 = vmatprep.subr.mxu0 %v1981_v4 }
 0x5cc   :  { %1828 = vmatpush3.msra.mxu0 %v2200_v56 }
 0x5cd   :  { %1829 = vmatprep.subr.mxu0 %v1981_v4 }
 0x5ce   :  { %1830 = vmatpush3.msra.mxu0 %v2207_v57 }
 0x5cf   :  { %1832 = vmatmul.mubr.msk.f32.vlgmr.msra.gmra.mxu0 %vm128_vm3, %v1612_v58  ;;  %1845 = vmatprep.subr.mxu0 %v1981_v4 }
 0x5d0   :  { %1846 = vmatpush3.msra.mxu0 %v2187_v54  ;;  %1853 = vmatprep.mubr.msk.f32.mxu0 %vm1982_vm2, %v1981_v4 }
 0x5d1   :  { %1847 = vmatprep.subr.mxu0 %v1981_v4 }
 0x5d2   :  { %1848 = vmatpush3.msra.mxu0 %v2192_v55 }
 0x5d3   :  { %1849 = vmatprep.subr.mxu0 %v1981_v4 }
 0x5d4   :  { %1850 = vmatpush3.msra.mxu0 %v2200_v56 }
 0x5d5   :  { %1851 = vmatprep.subr.mxu0 %v1981_v4 }
 0x5d6   :  { %1852 = vmatpush3.msra.mxu0 %v2207_v57 }
 0x5d7   :  { %1867 = vmatprep.subr.mxu0 %v1981_v4 }
 0x687   :  { %v746_v60 = vpop.f32.mrf.mxu0 }
 0x688   :  { %v750_v61 = vadd.f32 %v746_v60, %v676_v59 }
 0x689   :  { %v1811_v62 = vpop.f32.mrf.mxu0 }
 0x68a   :  { %1941 = vtanh.f32 %v750_v61 }
 0x68f   :  { %v928_v1 = vpop.f32.mrf.mxu0 }
 0x691   :  { %v1833_v2 = vpop.f32.mrf.mxu0 }
 0x697   :  { %v1942_v63 = vpop.eup %1941 }
 0x698   :  { %752 = vst.msk [vmem:[#allocation2 + $0xe] sm:$0x3] %vm212_vm4, %v1942_v63  ;;  %753 = vst.msk [vmem:[#allocation3] sm:$0x3] %vm212_vm4, %v1942_v63 }
 0x69f   :  { %v755_v0 = vld [vmem:[#allocation2 + $0x8] sm:$0xff] }
 0x6a0   :  { %1821 = vmatmul.mubr.msk.f32.vlgmr.msra.gmra.mxu1 %vm128_vm3, %v755_v0 }
 0x6a1   :  { %1835 = vmatpush3.msra.mxu1 %v2187_v54  ;;  %1842 = vmatprep.mubr.msk.f32.mxu1 %vm1982_vm2, %v1981_v4 }
 0x6a2   :  { %1836 = vmatprep.subr.mxu1 %v1981_v4 }
 0x6a3   :  { %1837 = vmatpush3.msra.mxu1 %v2192_v55 }
 0x6a4   :  { %1838 = vmatprep.subr.mxu1 %v1981_v4 }
 0x6a5   :  { %1839 = vmatpush3.msra.mxu1 %v2200_v56 }
 0x6a6   :  { %1840 = vmatprep.subr.mxu1 %v1981_v4 }
 0x6a7   :  { %1841 = vmatpush3.msra.mxu1 %v2207_v57 }
 0x6a8   :  { %1856 = vmatprep.subr.mxu1 %v1981_v4 }
 0x760   :  { %v1822_v5 = vpop.f32.mrf.mxu1 }
 0x761   :  { %v846_v6 = vadd.f32 %v1822_v5, %v1605_v3 }
 0x762   :  { %v840_v7 = vpop.f32.mrf.mxu1 }
 0x763   :  { %850 = vst.msk [vmem:[#allocation2 + $0x8] sm:$0xff] %vm128_vm3, %v846_v6  ;;  %v841_v8 = vadd.f32 %v1605_v3, %v840_v7 }
 0x765   :  { %849 = vst.msk [vmem:[#allocation2] sm:$0xff] %vm128_vm3, %v841_v8 }
 0x76a   :  { %v1166_v27 = vld [vmem:[#allocation2 + $0x8] sm:$0x3]  ;;  %v1243_v32 = vld [vmem:[#allocation2 + $0xa] sm:$0x3]  ;;  %v1320_v38 = vld [vmem:[#allocation2 + $0xc] sm:$0x3] }
 0x76b   :  { %v1397_v46 = vld [vmem:[#allocation2 + $0xe] sm:$0x3] }
 0x76c   :  { %v858_v9 = vld [vmem:[#allocation2] sm:$0x3]  ;;  %v935_v12 = vld [vmem:[#allocation2 + $0x2] sm:$0x3]  ;;  %v1012_v17 = vld [vmem:[#allocation2 + $0x4] sm:$0x3] }
 0x76d   :  { %v932_v10 = vadd.f32 %v928_v1, %v858_v9  ;;  %v1089_v22 = vld [vmem:[#allocation2 + $0x6] sm:$0x3] }
 0x76f   :  { %1943 = vtanh.f32 %v932_v10 }
 0x77c   :  { %v1944_v11 = vpop.eup %1943 }
 0x77d   :  { %934 = vst.msk [vmem:[#allocation2] sm:$0x3] %vm212_vm4, %v1944_v11  ;;  %1843 = vmatmul.mubr.msk.f32.vlgmr.msra.gmra.mxu1 %vm128_vm3, %v1944_v11 }
 0x77e   :  { %1857 = vmatpush3.msra.mxu1 %v2187_v54  ;;  %1864 = vmatprep.mubr.msk.f32.mxu1 %vm1982_vm2, %v1981_v4 }
 0x77f   :  { %1858 = vmatprep.subr.mxu1 %v1981_v4 }
 0x780   :  { %1859 = vmatpush3.msra.mxu1 %v2192_v55 }
 0x781   :  { %1860 = vmatprep.subr.mxu1 %v1981_v4 }
 0x782   :  { %1861 = vmatpush3.msra.mxu1 %v2200_v56 }
 0x783   :  { %1862 = vmatprep.subr.mxu1 %v1981_v4 }
 0x784   :  { %1863 = vmatpush3.msra.mxu1 %v2207_v57 }
 0x785   :  { %1878 = vmatprep.subr.mxu1 %v1981_v4 }
 0x83d   :  { %v1005_v13 = vpop.f32.mrf.mxu1 }
 0x83e   :  { %v1009_v14 = vadd.f32 %v1005_v13, %v935_v12 }
 0x83f   :  { %v1844_v15 = vpop.f32.mrf.mxu1 }
 0x840   :  { %1945 = vtanh.f32 %v1009_v14 }
 0x84d   :  { %v1946_v16 = vpop.eup %1945 }
 0x84e   :  { %1011 = vst.msk [vmem:[#allocation2 + $0x2] sm:$0x3] %vm212_vm4, %v1946_v16  ;;  %1854 = vmatmul.mubr.msk.f32.vlgmr.msra.gmra.mxu0 %vm128_vm3, %v1946_v16 }
 0x84f   :  { %1868 = vmatpush3.msra.mxu0 %v2187_v54  ;;  %1875 = vmatprep.mubr.msk.f32.mxu0 %vm1982_vm2, %v1981_v4 }
 0x850   :  { %1869 = vmatprep.subr.mxu0 %v1981_v4 }
 0x851   :  { %1870 = vmatpush3.msra.mxu0 %v2192_v55 }
 0x852   :  { %1871 = vmatprep.subr.mxu0 %v1981_v4 }
 0x853   :  { %1872 = vmatpush3.msra.mxu0 %v2200_v56 }
 0x854   :  { %1873 = vmatprep.subr.mxu0 %v1981_v4 }
 0x855   :  { %1874 = vmatpush3.msra.mxu0 %v2207_v57 }
 0x856   :  { %1889 = vmatprep.subr.mxu0 %v1981_v4 }
 0x90e   :  { %v1082_v18 = vpop.f32.mrf.mxu0 }
 0x90f   :  { %v1086_v19 = vadd.f32 %v1082_v18, %v1012_v17 }
 0x910   :  { %v1855_v20 = vpop.f32.mrf.mxu0 }
 0x911   :  { %1947 = vtanh.f32 %v1086_v19 }
 0x91e   :  { %v1948_v21 = vpop.eup %1947 }
 0x91f   :  { %1088 = vst.msk [vmem:[#allocation2 + $0x4] sm:$0x3] %vm212_vm4, %v1948_v21  ;;  %1865 = vmatmul.mubr.msk.f32.vlgmr.msra.gmra.mxu1 %vm128_vm3, %v1948_v21 }
 0x920   :  { %1879 = vmatpush3.msra.mxu1 %v2187_v54  ;;  %1886 = vmatprep.mubr.msk.f32.mxu1 %vm1982_vm2, %v1981_v4 }
 0x921   :  { %1880 = vmatprep.subr.mxu1 %v1981_v4 }
 0x922   :  { %1881 = vmatpush3.msra.mxu1 %v2192_v55 }
 0x923   :  { %1882 = vmatprep.subr.mxu1 %v1981_v4 }
 0x924   :  { %1883 = vmatpush3.msra.mxu1 %v2200_v56 }
 0x925   :  { %1884 = vmatprep.subr.mxu1 %v1981_v4 }
 0x926   :  { %1885 = vmatpush3.msra.mxu1 %v2207_v57 }
 0x927   :  { %1900 = vmatprep.subr.mxu1 %v1981_v4 }
 0x9df   :  { %v1159_v23 = vpop.f32.mrf.mxu1 }
 0x9e0   :  { %v1163_v24 = vadd.f32 %v1159_v23, %v1089_v22 }
 0x9e1   :  { %v1866_v25 = vpop.f32.mrf.mxu1 }
 0x9e2   :  { %1949 = vtanh.f32 %v1163_v24 }
 0x9ef   :  { %v1950_v26 = vpop.eup %1949 }
 0x9f0   :  { %1165 = vst.msk [vmem:[#allocation2 + $0x6] sm:$0x3] %vm212_vm4, %v1950_v26  ;;  %1876 = vmatmul.mubr.msk.f32.vlgmr.msra.gmra.mxu0 %vm128_vm3, %v1950_v26 }
 0x9f1   :  { %1890 = vmatpush3.msra.mxu0 %v2187_v54  ;;  %1897 = vmatprep.mubr.msk.f32.mxu0 %vm1982_vm2, %v1981_v4 }
 0x9f2   :  { %1891 = vmatprep.subr.mxu0 %v1981_v4 }
 0x9f3   :  { %1892 = vmatpush3.msra.mxu0 %v2192_v55 }
 0x9f4   :  { %1893 = vmatprep.subr.mxu0 %v1981_v4 }
 0x9f5   :  { %1894 = vmatpush3.msra.mxu0 %v2200_v56 }
 0x9f6   :  { %1895 = vmatprep.subr.mxu0 %v1981_v4 }
 0x9f7   :  { %1896 = vmatpush3.msra.mxu0 %v2207_v57  ;;  %v1476_v37 = vld [vmem:[#allocation2] sm:$0xff] }
 0x9f8   :  { %1911 = vmatprep.subr.mxu0 %v1481_v42 }
 0xab0   :  { %v1236_v28 = vpop.f32.mrf.mxu0 }
 0xab1   :  { %v1240_v29 = vadd.f32 %v1236_v28, %v1166_v27 }
 0xab2   :  { %v1877_v30 = vpop.f32.mrf.mxu0 }
 0xab3   :  { %1951 = vtanh.f32 %v1240_v29 }
 0xac0   :  { %v1952_v31 = vpop.eup %1951 }
 0xac1   :  { %1242 = vst.msk [vmem:[#allocation2 + $0x8] sm:$0x3] %vm212_vm4, %v1952_v31  ;;  %1887 = vmatmul.mubr.msk.f32.vlgmr.msra.gmra.mxu1 %vm128_vm3, %v1952_v31 }
 0xac2   :  { %1901 = vmatpush3.msra.mxu1 %v2187_v54  ;;  %1908 = vmatprep.mubr.msk.f32.mxu1 %vm1982_vm2, %v1981_v4 }
 0xac3   :  { %1902 = vmatprep.subr.mxu1 %v1981_v4 }
 0xac4   :  { %1903 = vmatpush3.msra.mxu1 %v2192_v55 }
 0xac5   :  { %1904 = vmatprep.subr.mxu1 %v1981_v4 }
 0xac6   :  { %1905 = vmatpush3.msra.mxu1 %v2200_v56 }
 0xac7   :  { %1906 = vmatprep.subr.mxu1 %v1981_v4 }
 0xac8   :  { %1907 = vmatpush3.msra.mxu1 %v2207_v57 }
 0xb81   :  { %v1313_v33 = vpop.f32.mrf.mxu1 }
 0xb82   :  { %v1317_v34 = vadd.f32 %v1313_v33, %v1243_v32 }
 0xb83   :  { %v1888_v35 = vpop.f32.mrf.mxu1 }
 0xb84   :  { %1953 = vtanh.f32 %v1317_v34 }
 0xb91   :  { %v1954_v36 = vpop.eup %1953 }
 0xb92   :  { %1319 = vst.msk [vmem:[#allocation2 + $0xa] sm:$0x3] %vm212_vm4, %v1954_v36  ;;  %1898 = vmatmul.mubr.msk.f32.vlgmr.msra.gmra.mxu0 %vm128_vm3, %v1954_v36 }
 0xb93   :  { %1919 = vmatprep.mubr.msk.f32.mxu0 %vm128_vm3, %v1476_v37  ;;  %1912 = vmatpush3.msra.mxu0 %v1481_v42 }
 0xb94   :  { %1913 = vmatprep.subr.mxu0 %v1480_v43 }
 0xb95   :  { %1914 = vmatpush3.msra.mxu0 %v1480_v43 }
 0xb96   :  { %1915 = vmatprep.subr.mxu0 %v1479_v44 }
 0xb97   :  { %1916 = vmatpush3.msra.mxu0 %v1479_v44 }
 0xb98   :  { %1917 = vmatprep.subr.mxu0 %v1478_v45 }
 0xb99   :  { %1918 = vmatpush3.msra.mxu0 %v1478_v45 }
 0xc52   :  { %v1390_v39 = vpop.f32.mrf.mxu0 }
 0xc53   :  { %v1394_v40 = vadd.f32 %v1390_v39, %v1320_v38 }
 0xc54   :  { %v1899_v41 = vpop.f32.mrf.mxu0 }
 0xc55   :  { %1955 = vtanh.f32 %v1394_v40 }
 0xc62   :  { %v1956_v4 = vpop.eup %1955 }
 0xc63   :  { %1396 = vst.msk [vmem:[#allocation2 + $0xc] sm:$0x3] %vm212_vm4, %v1956_v4  ;;  %1909 = vmatmul.mubr.msk.f32.vlgmr.msra.gmra.mxu1 %vm128_vm3, %v1956_v4 }
 0xd23   :  { %v1467_v47 = vpop.f32.mrf.mxu1 }
 0xd24   :  { %v1471_v48 = vadd.f32 %v1467_v47, %v1397_v46 }
 0xd25   :  { %v1910_v49 = vpop.f32.mrf.mxu1 }
 0xd26   :  { %1957 = vtanh.f32 %v1471_v48 }
 0xd33   :  { %v1958_v50 = vpop.eup %1957 }
 0xd34   :  { %1473 = vst.msk [vmem:[#allocation2 + $0xe] sm:$0x3] %vm212_vm4, %v1958_v50  ;;  %1475 = vst.msk [vmem:[#allocation3 + $0x2] sm:$0x3] %vm212_vm4, %v1958_v50 }
 0xd3b   :  { %v1477_v51 = vld [vmem:[#allocation2 + $0x8] sm:$0xff] }
 0xd3c   :  { %1920 = vmatmul.mubr.msk.f32.vlgmr.msra.gmra.mxu0 %vm128_vm3, %v1477_v51 }
 0xd3d   :  { %1970 = shalt.err (!%p1967_p4)
}
 0xd3e   :  { %s1984_s28 = smov 32   ;;  %s1985_s29 = smov 2   ;;  %v1621_v52 = vld [vmem:[%s2342_s7] ss:$0 sm:$0xff] }
 0xd3f   :  { %1585 = dma.vmem_to_hbm [thread:$0]  %s1580_s27, 64, %s2344_s9, [#allocation4], %s1984_s28, %s1984_s28, %s1985_s29  }
 0xdfc   :  { %v1921_v53 = vpop.f32.mrf.mxu0 }
 0xdfd   :  { %v1567_v54 = vadd.f32 %v1921_v53, %v1621_v52 }
 0xdfe   :  { %v1561_v55 = vpop.f32.mrf.mxu0 }
 0xdff   :  { %1571 = vst [vmem:[%s2343_s8 + $0x8] sm:$0xff] %v1567_v54  ;;  %v1562_v56 = vadd.f32 %v1621_v52, %v1561_v55 }
 0xe01   :  { %1570 = vst [vmem:[%s2343_s8] sm:$0xff] %v1562_v56 }
 0xe02   :  { %1979 = dma.done.wait [#allocation4], 64  }
 0xe03   :  { %1980 = vsyncadd [#allocation4], 4294967232 }
 0xe04   :  { %1591 = vsyncpa [#allocation4], 1 }

</bundles_post_ra>
